<compile_context>
chip_gen: v6e
topology: v6e:2x2x1
jax: 0.10.0
libtpu: 0.0.40
codegen_flags: <defaults>
</compile_context>

<pallas_src>
import math
import functools

import jax
import jax.numpy as jnp
from jax.experimental import pallas as pl
from jax.experimental.pallas import tpu as pltpu


# ---------------------------------------------------------------------------
# helpers
# ---------------------------------------------------------------------------
def _make_freqs_phase(num_channels, flip_sin_to_cos, downscale_freq_shift,
                      scale, max_period):
    """Precompute (1, C) frequency and phase rows (hoisted out of the kernel).

    out[:, j] = sin(t * freqs_full[j] + phase[j]); phase = pi/2 turns sin into
    cos, and its half-placement implements flip_sin_to_cos with no branch.
    """
    half = num_channels // 2
    assert float(half) != float(downscale_freq_shift), (
        "half_dim == downscale_freq_shift would divide by zero")
    exponent = -math.log(max_period) * jnp.arange(half, dtype=jnp.float32)
    exponent = exponent / (half - downscale_freq_shift)
    freqs = jnp.exp(exponent) * jnp.float32(scale)          # (half,)
    freqs_full = jnp.concatenate([freqs, freqs])             # (C,)
    zeros = jnp.zeros((half,), jnp.float32)
    pis = jnp.full((half,), jnp.float32(math.pi / 2.0))
    if flip_sin_to_cos:
        phase = jnp.concatenate([pis, zeros])                 # [cos | sin]
    else:
        phase = jnp.concatenate([zeros, pis])                 # [sin | cos]
    return freqs_full.reshape(1, num_channels), phase.reshape(1, num_channels)


def _tile_and_pad(n, tile_n_max=512):
    """Pick a batch tile (multiple of 8, <=512 rows) and the padded batch."""
    tile_n = min(tile_n_max, ((n + 7) // 8) * 8)
    n_pad = pl.cdiv(n, tile_n) * tile_n
    return tile_n, n_pad


# ---------------------------------------------------------------------------
# kernels
# ---------------------------------------------------------------------------
def _sinusoid_kernel(t_ref, freqs_ref, phase_ref, out_ref):
    # t_ref: (tile_n, 1) f32 ; freqs/phase: (1, C) ; out: (tile_n, C)
    emb = t_ref[...] * freqs_ref[...] + phase_ref[...]   # VPU broadcast
    out_ref[...] = jnp.sin(emb).astype(out_ref.dtype)    # EUP, single pass


def _mlp_body(x, w1, b1, w2, b2):
    # linear_1 -> SiLU -> linear_2, all in f32; matmuls on the MXU.
    h = jnp.dot(x, w1, preferred_element_type=jnp.float32) + b1
    h = h * (1.0 / (1.0 + jnp.exp(-h)))                   # SiLU (exp on EUP)
    return jnp.dot(h, w2, preferred_element_type=jnp.float32) + b2


def _mlp_kernel(x_ref, w1_ref, b1_ref, w2_ref, b2_ref, out_ref):
    out = _mlp_body(x_ref[...].astype(jnp.float32),
                    w1_ref[...], b1_ref[...], w2_ref[...], b2_ref[...])
    out_ref[...] = out.astype(out_ref.dtype)


def _fused_kernel(t_ref, freqs_ref, phase_ref,
                  w1_ref, b1_ref, w2_ref, b2_ref, out_ref):
    # Sinusoid never leaves VMEM/vregs; feeds the MXU directly.
    emb = jnp.sin(t_ref[...] * freqs_ref[...] + phase_ref[...])
    out = _mlp_body(emb, w1_ref[...], b1_ref[...], w2_ref[...], b2_ref[...])
    out_ref[...] = out.astype(out_ref.dtype)


# ---------------------------------------------------------------------------
# wrappers
# ---------------------------------------------------------------------------
def timesteps_embedding(timesteps, num_channels, flip_sin_to_cos=False,
                        downscale_freq_shift=1.0, scale=1.0, max_period=10000,
                        tile_n=512):
    """Pallas equivalent of diffusers `Timesteps(num_channels, ...)(timesteps)`."""
    assert timesteps.ndim == 1, "Timesteps should be a 1d-array"
    # TODO(synk): odd num_channels would require a trailing zero-pad column
    # (diffusers behavior); only even dims supported here.
    assert num_channels % 2 == 0, "only even embedding dims supported"
    n = timesteps.shape[0]
    freqs_full, phase = _make_freqs_phase(
        num_channels, flip_sin_to_cos, downscale_freq_shift, scale, max_period)

    tile_n, n_pad = _tile_and_pad(n, tile_n)
    t2d = timesteps.astype(jnp.float32).reshape(n, 1)
    if n_pad != n:
        t2d = jnp.pad(t2d, ((0, n_pad - n), (0, 0)))

    out = pl.pallas_call(
        _sinusoid_kernel,
        out_shape=jax.ShapeDtypeStruct((n_pad, num_channels), jnp.float32),
        grid=(n_pad // tile_n,),
        in_specs=[
            pl.BlockSpec((tile_n, 1), lambda i: (i, 0)),
            pl.BlockSpec((1, num_channels), lambda i: (0, 0)),
            pl.BlockSpec((1, num_channels), lambda i: (0, 0)),
        ],
        out_specs=pl.BlockSpec((tile_n, num_channels), lambda i: (i, 0)),
        compiler_params=pltpu.CompilerParams(
            dimension_semantics=("parallel",)),
    )(t2d, freqs_full, phase)
    return out[:n]


class Timesteps:
    """Thin wrapper mirroring the PyTorch `Timesteps` interface (no params)."""

    def __init__(self, num_channels, flip_sin_to_cos, downscale_freq_shift):
        self.num_channels = num_channels
        self.flip_sin_to_cos = flip_sin_to_cos
        self.downscale_freq_shift = downscale_freq_shift

    def __call__(self, timesteps):
        return timesteps_embedding(
            timesteps, self.num_channels,
            flip_sin_to_cos=self.flip_sin_to_cos,
            downscale_freq_shift=self.downscale_freq_shift)


class TimestepEmbedding:
    """Pallas version of the spec module: linear_1 -> SiLU -> linear_2.

    Weights are stored pre-transposed as (in, out) so the kernel computes
    x @ W + b (same math as PyTorch's x @ W.T + b with W=(out, in)).
    """

    def __init__(self, channel, time_embed_dim, act_fn="silu", *,
                 key, dtype=jnp.float32):
        assert act_fn == "silu", "only act_fn='silu' supported"
        k1, k2, k3, k4 = jax.random.split(key, 4)
        lim1 = 1.0 / math.sqrt(channel)
        lim2 = 1.0 / math.sqrt(time_embed_dim)
        self.w1 = jax.random.uniform(k1, (channel, time_embed_dim), dtype, -lim1, lim1)
        self.b1 = jax.random.uniform(k2, (1, time_embed_dim), dtype, -lim1, lim1)
        self.w2 = jax.random.uniform(k3, (time_embed_dim, time_embed_dim), dtype, -lim2, lim2)
        self.b2 = jax.random.uniform(k4, (1, time_embed_dim), dtype, -lim2, lim2)
        self.channel = channel
        self.time_embed_dim = time_embed_dim

    def __call__(self, sample, tile_n=512):
        """forward(sample): sample is (N, channel) -> (N, time_embed_dim)."""
        n, c = sample.shape
        assert c == self.channel
        h = self.time_embed_dim
        tile_n, n_pad = _tile_and_pad(n, tile_n)
        x = sample
        if n_pad != n:
            x = jnp.pad(x, ((0, n_pad - n), (0, 0)))

        out = pl.pallas_call(
            _mlp_kernel,
            out_shape=jax.ShapeDtypeStruct((n_pad, h), sample.dtype),
            grid=(n_pad // tile_n,),
            in_specs=[
                pl.BlockSpec((tile_n, c), lambda i: (i, 0)),
                pl.BlockSpec((c, h), lambda i: (0, 0)),
                pl.BlockSpec((1, h), lambda i: (0, 0)),
                pl.BlockSpec((h, h), lambda i: (0, 0)),
                pl.BlockSpec((1, h), lambda i: (0, 0)),
            ],
            out_specs=pl.BlockSpec((tile_n, h), lambda i: (i, 0)),
            compiler_params=pltpu.CompilerParams(
                dimension_semantics=("parallel",)),
        )(x, self.w1, self.b1, self.w2, self.b2)
        return out[:n]

    def forward_fused(self, timesteps, flip_sin_to_cos=True,
                      downscale_freq_shift=1.0, scale=1.0, max_period=10000,
                      tile_n=512, out_dtype=None):
        """Fused sinusoid + MLP: one pallas_call, no HBM round-trip of [N, C]."""
        assert timesteps.ndim == 1
        assert self.channel % 2 == 0
        n = timesteps.shape[0]
        c, h = self.channel, self.time_embed_dim
        freqs_full, phase = _make_freqs_phase(
            c, flip_sin_to_cos, downscale_freq_shift, scale, max_period)

        tile_n, n_pad = _tile_and_pad(n, tile_n)
        t2d = timesteps.astype(jnp.float32).reshape(n, 1)
        if n_pad != n:
            t2d = jnp.pad(t2d, ((0, n_pad - n), (0, 0)))
        out_dtype = jnp.float32 if out_dtype is None else out_dtype

        out = pl.pallas_call(
            _fused_kernel,
            out_shape=jax.ShapeDtypeStruct((n_pad, h), out_dtype),
            grid=(n_pad // tile_n,),
            in_specs=[
                pl.BlockSpec((tile_n, 1), lambda i: (i, 0)),
                pl.BlockSpec((1, c), lambda i: (0, 0)),
                pl.BlockSpec((1, c), lambda i: (0, 0)),
                pl.BlockSpec((c, h), lambda i: (0, 0)),
                pl.BlockSpec((1, h), lambda i: (0, 0)),
                pl.BlockSpec((h, h), lambda i: (0, 0)),
                pl.BlockSpec((1, h), lambda i: (0, 0)),
            ],
            out_specs=pl.BlockSpec((tile_n, h), lambda i: (i, 0)),
            compiler_params=pltpu.CompilerParams(
                dimension_semantics=("parallel",)),
        )(t2d, freqs_full, phase, self.w1, self.b1, self.w2, self.b2)
        return out[:n]


# ---------------------------------------------------------------------------
# pure-JAX references
# ---------------------------------------------------------------------------
def _ref_sinusoid(timesteps, embedding_dim, flip_sin_to_cos=False,
                  downscale_freq_shift=1.0, scale=1.0, max_period=10000):
    half_dim = embedding_dim // 2
    exponent = -math.log(max_period) * jnp.arange(half_dim, dtype=jnp.float32)
    exponent = exponent / (half_dim - downscale_freq_shift)
    emb = jnp.exp(exponent)
    emb = timesteps[:, None].astype(jnp.float32) * emb[None, :]
    emb = scale * emb
    emb = jnp.concatenate([jnp.sin(emb), jnp.cos(emb)], axis=-1)
    if flip_sin_to_cos:
        emb = jnp.concatenate([emb[:, half_dim:], emb[:, :half_dim]], axis=-1)
    return emb


def _ref_mlp(x, w1, b1, w2, b2):
    hp = jax.lax.Precision.HIGHEST
    h = jnp.dot(x.astype(jnp.float32), w1, precision=hp) + b1
    h = h * jax.nn.sigmoid(h)
    return jnp.dot(h, w2, precision=hp) + b2


# ---------------------------------------------------------------------------
# smoke test
# ---------------------------------------------------------------------------
if __name__ == "__main__":
    key = jax.random.PRNGKey(0)
    k_t, k_params = jax.random.split(key)

    batch = 8
    channel = 256          # sinusoidal width (even; half_dim=128 lane-aligned)
    time_embed_dim = 128

    timesteps = jax.random.uniform(k_t, (batch,), jnp.float32) * 1000.0

    # (a) improved standalone sinusoid kernel
    emb = jax.block_until_ready(
        timesteps_embedding(timesteps, channel, flip_sin_to_cos=True,
                            downscale_freq_shift=1.0))
    emb_ref = _ref_sinusoid(timesteps, channel, flip_sin_to_cos=True,
                            downscale_freq_shift=1.0)
    assert emb.shape == (batch, channel) and emb.dtype == jnp.float32
    # sin/cos of args ~1e3: TPU vs XLA argument reduction differs by ~1e-4.
    assert jnp.allclose(emb, emb_ref, atol=5e-3, rtol=5e-3), "sinusoid mismatch"

    # (b) the spec module: TimestepEmbedding MLP forward on `sample`
    module = TimestepEmbedding(channel, time_embed_dim, act_fn="silu", key=k_params)
    out = jax.block_until_ready(module(emb))
    out_ref = _ref_mlp(emb, module.w1, module.b1, module.w2, module.b2)
    assert out.shape == (batch, time_embed_dim)
    assert jnp.allclose(out, out_ref, atol=2e-2, rtol=2e-2), "mlp mismatch"

    # (c) fused sinusoid + MLP (highest-value perf item: no HBM round-trip)
    out_fused = jax.block_until_ready(
        module.forward_fused(timesteps, flip_sin_to_cos=True,
                             downscale_freq_shift=1.0))
    out_fused_ref = _ref_mlp(emb_ref, module.w1, module.b1, module.w2, module.b2)
    assert out_fused.shape == (batch, time_embed_dim)
    assert jnp.allclose(out_fused, out_fused_ref, atol=2e-2, rtol=2e-2), \
        "fused mismatch"

    print("KERNEL_OK")
</pallas_src>

<mosaic_0001>
module attributes {stable_mosaic.version = 11 : i64} {
  func.func @_sinusoid_kernel(%arg0: i32, %arg1: memref<8x1xf32, #tpu.memory_space<vmem>>, %arg2: memref<1x256xf32, #tpu.memory_space<vmem>>, %arg3: memref<1x256xf32, #tpu.memory_space<vmem>>, %arg4: memref<8x256xf32, #tpu.memory_space<vmem>>) attributes {dimension_semantics = [#tpu.dimension_semantics<parallel>], iteration_bounds = array<i64: 1>, scalar_prefetch = 0 : i64, scratch_operands = 0 : i64, tpu.core_type = #tpu.core_type<tc>, window_params = [{transform_indices = @transform_0, window_bounds = array<i64: 8, 1>}, {pipeline_mode = #tpu.pipeline_mode<synchronous>, transform_indices = @transform_1, window_bounds = array<i64: 1, 256>}, {pipeline_mode = #tpu.pipeline_mode<synchronous>, transform_indices = @transform_2, window_bounds = array<i64: 1, 256>}, {transform_indices = @transform_3, window_bounds = array<i64: 8, 256>}]} {
    %c0 = arith.constant 0 : index
    %c0_0 = arith.constant 0 : index
    %0 = vector.load %arg1[%c0, %c0_0] : memref<8x1xf32, #tpu.memory_space<vmem>>, vector<8x1xf32>
    %c0_1 = arith.constant 0 : index
    %c0_2 = arith.constant 0 : index
    %1 = vector.load %arg2[%c0_1, %c0_2] : memref<1x256xf32, #tpu.memory_space<vmem>>, vector<1x256xf32>
    %2 = vector.broadcast %0 : vector<8x1xf32> to vector<8x256xf32>
    %3 = vector.broadcast %1 : vector<1x256xf32> to vector<8x256xf32>
    %4 = arith.mulf %2, %3 : vector<8x256xf32>
    %c0_3 = arith.constant 0 : index
    %c0_4 = arith.constant 0 : index
    %5 = vector.load %arg3[%c0_3, %c0_4] : memref<1x256xf32, #tpu.memory_space<vmem>>, vector<1x256xf32>
    %6 = vector.broadcast %5 : vector<1x256xf32> to vector<8x256xf32>
    %7 = arith.addf %4, %6 : vector<8x256xf32>
    %8 = math.sin %7 : vector<8x256xf32>
    %c0_5 = arith.constant 0 : index
    %c0_6 = arith.constant 0 : index
    %9 = vector.load %arg4[%c0_5, %c0_6] : memref<8x256xf32, #tpu.memory_space<vmem>>, vector<8x256xf32>
    tpu.vector_store %arg4[%c0_5, %c0_6], %8 {strides = array<i32>} : memref<8x256xf32, #tpu.memory_space<vmem>>, vector<8x256xf32>,
    return
  }
  func.func @transform_0(%arg0: i32) -> (i32, i32) {
    %c0_i32 = arith.constant 0 : i32
    %c0_i32_0 = arith.constant 0 : i32
    return %arg0, %c0_i32 : i32, i32
  }
  func.func @transform_1(%arg0: i32) -> (i32, i32) {
    %c0_i32 = arith.constant 0 : i32
    %c0_i32_0 = arith.constant 0 : i32
    %c0_i32_1 = arith.constant 0 : i32
    return %c0_i32, %c0_i32_0 : i32, i32
  }
  func.func @transform_2(%arg0: i32) -> (i32, i32) {
    %c0_i32 = arith.constant 0 : i32
    %c0_i32_0 = arith.constant 0 : i32
    %c0_i32_1 = arith.constant 0 : i32
    return %c0_i32, %c0_i32_0 : i32, i32
  }
  func.func @transform_3(%arg0: i32) -> (i32, i32) {
    %c0_i32 = arith.constant 0 : i32
    %c0_i32_0 = arith.constant 0 : i32
    return %arg0, %c0_i32 : i32, i32
  }
}

</mosaic_0001>

<bundles_post_ra>
// kernel: tpu_custom_call.1
= control target key start
LH: loop header
LB: loop body
LE: loop exit
PB: predicated region body
PF: predicated region fallthrough
CT: control target
= control target key end

     0   :  { %v328_v1 = vmov 0   ;;  %s430_s0 = inlined_call_operand.vmem [shape: f32[8,1], index: 0, kind: input, shape index: {}]   ;;  %s431_s1 = inlined_call_operand.vmem [shape: f32[1,256], index: 1, kind: input, shape index: {}]   ;;  %s432_s2 = inlined_call_operand.vmem [shape: f32[1,256], index: 2, kind: input, shape index: {}]   ;;  %s433_s3 = inlined_call_operand.hbm [shape: f32[8,256], index: 3, kind: output, shape index: {}]  }
   0x1   :  { %v15_v0 = vld [vmem:[%s430_s0] sm:$0xff]  ;;  %297 = vset.pattern.permute.xlu0 %v328_v1 }
   0x2   :  { %19 = vperm.xlu0 %297, %v15_v0  }
   0x3   :  { %8 = vsyncpa [#allocation3], 0  ;;  %v23_v2 = vlaneseq  ;;  %v16_v6 = vld [vmem:[%s431_s1] sm:$0x3]  ;;  %v329_v37 = vmov 683565275  }
   0x4   :  { %v35_v7 = vld [vmem:[%s432_s2] sm:$0x3]  ;;  %v330_v41 = vmov 2475754826   ;;  %v331_v43 = vmov 2131351028  }
   0x5   :  { %v24_v3 = vshrl.u32 %v23_v2, 7  ;;  %v332_v45 = vmov 2102212464   ;;  %v333_v47 = vmov 920167782   ;;  %s335_s0 = smov [#allocation2]  }
   0x6   :  { %v334_v54 = vmov 1326507024   ;;  %s265_s1 = sshll.u32 %s335_s0, 4  ;;  %s266_s1 = int_to_ptr.vmem [resolvable:$true] %s265_s1 }
   0x7   :  { %v25_v4 = vsub.s32 0, %v24_v3  ;;  %v29_v5 = vsub.s32 1, %v24_v3  ;;  %s306_s2 = scalar_lea.vmem %s266_s1, 256  ;;  %p311_p1 = scmp.lt.s32.totalorder %s266_s1, %s266_s1 }
   0x8   :  { %p307_p0 = scmp.ne.s32.totalorder %s266_s1, %s306_s2  ;;  %p312_p2 = scmp.lt.s32.totalorder %s306_s2, %s306_s2 }
   0x9   :  { %v26_v8 = vrot.slane %v16_v6, %v25_v4  ;;  %v30_v9 = vrot.slane %v16_v6, %v29_v5  ;;  %v40_v10 = vrot.slane %v35_v7, %v25_v4  ;;  %v44_v11 = vrot.slane %v35_v7, %v29_v5 }
   0xa   :  { %p313_p3 = por %p312_p2, %p311_p1 }
   0xc   :  { %p314_p4 = pnand %p313_p3, %p307_p0 }
  0x7d   :  { %v20_v12 = vpop.permute.xlu0 %19 }
  0x7e   :  { %v33_v13 = vmul.f32 %v26_v8, %v20_v12  ;;  %v34_v14 = vmul.f32 %v30_v9, %v20_v12 }
  0x80   :  { %v365_v15 = vadd.f32 %v40_v10, %v33_v13  ;;  %v367_v16 = vadd.f32 %v44_v11, %v34_v14 }
  0x82   :  { %v49_v17 = vand.u32 2147483647, %v365_v15  ;;  %v52_v18 = vand.u32 2139095040, %v365_v15  ;;  %v156_v19 = vand.u32 2139095040, %v367_v16  ;;  %v153_v22 = vand.u32 2147483647, %v367_v16 }
  0x83   :  { %vm51_vm14 = vcmp.lt.s32.totalorder %v365_v15, 0 }
  0x84   :  { %v53_v20 = vshrl.u32 %v52_v18, 23  ;;  %v56_v21 = vand.u32 8388607, %v49_v17  ;;  %v157_v23 = vshrl.u32 %v156_v19, 23  ;;  %v377_v28 = vand.u32 8388607, %v153_v22 }
  0x85   :  { %vm50_vm15 = vcmp.le.f32.partialorder %v49_v17, 0.7853982 }
  0x86   :  { %v273_v24 = vadd.s32 4294967169, %v53_v20  ;;  %v277_v25 = vadd.s32 4294967169, %v157_v23  ;;  %v57_v27 = vor.u32 8388608, %v56_v21  ;;  %v161_v35 = vor.u32 8388608, %v377_v28 }
  0x88   :  { %v59_v26 = vadd.s32 1, %v273_v24  ;;  %v163_v29 = vadd.s32 1, %v277_v25  ;;  %v379_v34 = vshll.u32 %v57_v27, 8 }
  0x8a   :  { %vm60_vm0 = vcmp.gt.s32.totalorder %v59_v26, 0  ;;  %vm164_vm1 = vcmp.gt.s32.totalorder %v163_v29, 0 }
  0x8b   :  { %v61_v30 = vsel %vm60_vm0, %v59_v26, 0  ;;  %v165_v33 = vsel %vm164_vm1, %v163_v29, 0  ;;  %v201_v29 = vshll.u32 %v161_v35, 8  ;;  %vm155_vm0 = vcmp.lt.s32.totalorder %v367_v16, 0 }
  0x8c   :  { %v62_v31 = vshrl.u32 %v61_v30, 5  ;;  %v63_v32 = vand.u32 31, %v61_v30  ;;  %v382_v39 = vshrl.u32 %v165_v33, 5  ;;  %v167_v40 = vand.u32 31, %v165_v33 }
  0x8d   :  { %vm154_vm1 = vcmp.le.f32.partialorder %v153_v22, 0.7853982 }
  0x8e   :  { %v64_v36 = vsub.s32 32, %v63_v32  ;;  %v66_v38 = vshll.u32 %v329_v37, %v63_v32  ;;  %v69_v42 = vshll.u32 %v330_v41, %v63_v32  ;;  %v72_v44 = vshll.u32 %v331_v43, %v63_v32 }
  0x8f   :  { %v75_v46 = vshll.u32 %v332_v45, %v63_v32  ;;  %v78_v48 = vshll.u32 %v333_v47, %v63_v32  ;;  %vm81_vm2 = vcmp.lt.s32.totalorder %v62_v31, 1  ;;  %vm82_vm3 = vcmp.lt.s32.totalorder %v62_v31, 2 }
  0x90   :  { %v67_v49 = vshrl.u32 %v330_v41, %v64_v36  ;;  %v70_v50 = vshrl.u32 %v331_v43, %v64_v36  ;;  %v73_v51 = vshrl.u32 %v332_v45, %v64_v36  ;;  %v65_v52 = vshrl.u32 %v329_v37, %v64_v36 }
  0x91   :  { %v76_v53 = vshrl.u32 %v333_v47, %v64_v36  ;;  %v79_v55 = vshrl.u32 %v334_v54, %v64_v36  ;;  %v168_v59 = vsub.s32 32, %v167_v40  ;;  %vm83_vm4 = vcmp.lt.s32.totalorder %v62_v31, 3 }
  0x92   :  { %v68_v56 = vor.u32 %v67_v49, %v66_v38  ;;  %v71_v57 = vor.u32 %v70_v50, %v69_v42  ;;  %v74_v58 = vor.u32 %v73_v51, %v72_v44  ;;  %vm84_vm5 = vcmp.lt.s32.totalorder %v62_v31, 4 }
  0x93   :  { %v77_v60 = vor.u32 %v76_v53, %v75_v46  ;;  %v80_v61 = vor.u32 %v79_v55, %v78_v48  ;;  %v170_v5 = vshll.u32 %v329_v37, %v167_v40  ;;  %v171_v8 = vshrl.u32 %v330_v41, %v168_v59 }
  0x94   :  { %v85_v62 = vsel %vm81_vm2, %v65_v52, %v68_v56  ;;  %v86_v63 = vsel %vm84_vm5, %v74_v58, 2102212464  ;;  %v89_v0 = vsel %vm81_vm2, %v68_v56, %v71_v57  ;;  %v93_v1 = vsel %vm81_vm2, %v71_v57, %v74_v58 }
  0x95   :  { %v87_v2 = vsel %vm83_vm4, %v71_v57, %v86_v63  ;;  %v90_v3 = vsel %vm84_vm5, %v77_v60, 920167782  ;;  %v94_v4 = vsel %vm84_vm5, %v80_v61, 1326507024  ;;  %v173_v9 = vshll.u32 %v330_v41, %v167_v40 }
  0x96   :  { %v91_v6 = vsel %vm83_vm4, %v74_v58, %v90_v3  ;;  %v95_v7 = vsel %vm83_vm4, %v77_v60, %v94_v4  ;;  %v88_v10 = vsel %vm82_vm3, %v85_v62, %v87_v2  ;;  %v174_v13 = vshrl.u32 %v331_v43, %v168_v59 }
  0x97   :  { %v92_v11 = vsel %vm82_vm3, %v89_v0, %v91_v6  ;;  %v96_v12 = vsel %vm82_vm3, %v93_v1, %v95_v7  ;;  %v172_v21 = vor.u32 %v171_v8, %v170_v5  ;;  %v176_v24 = vshll.u32 %v331_v43, %v167_v40 }
  0x98   :  { %v391_v14 = vmul.u32.u64.low %v379_v34, %v96_v12  ;;  %v392_v18 = vmul.u32.u64.high %v379_v34, %v96_v12, %v391_v14  ;;  %v395_v19 = vmul.u32.u64.low %v379_v34, %v92_v11  ;;  %v396_v20 = vmul.u32.u64.high %v379_v34, %v92_v11, %v395_v19 }
  0x99   :  { %v175_v23 = vor.u32 %v174_v13, %v173_v9  ;;  %v177_v25 = vshrl.u32 %v332_v45, %v168_v59  ;;  %v179_v26 = vshll.u32 %v332_v45, %v167_v40  ;;  %v180_v27 = vshrl.u32 %v333_v47, %v168_v59 }
  0x9a   :  { %v183_v28 = vshrl.u32 %v334_v54, %v168_v59  ;;  %v104_v30 = vmul.u32 %v379_v34, %v88_v10  ;;  %v169_v31 = vshrl.u32 %v329_v37, %v168_v59  ;;  %v182_v33 = vshll.u32 %v333_v47, %v167_v40 }
  0x9b   :  { %v178_v32 = vor.u32 %v177_v25, %v176_v24  ;;  %vm106_vm6 = vc.u32 %v392_v18, %v395_v19  ;;  %v107_v36 = vadd.s32 1, %v396_v20  ;;  %v181_v38 = vor.u32 %v180_v27, %v179_v26 }
  0x9c   :  { %vm185_vm7 = vcmp.lt.s32.totalorder %v382_v39, 1  ;;  %v184_v41 = vor.u32 %v183_v28, %v182_v33  ;;  %vm187_vm8 = vcmp.lt.s32.totalorder %v382_v39, 3  ;;  %vm188_vm9 = vcmp.lt.s32.totalorder %v382_v39, 4 }
  0x9d   :  { %v193_v42 = vsel %vm185_vm7, %v172_v21, %v175_v23  ;;  %v108_v35 = vsel %vm106_vm6, %v107_v36, %v396_v20  ;;  %v190_v43 = vsel %vm188_vm9, %v178_v32, 2102212464  ;;  %v194_v34 = vsel %vm188_vm9, %v181_v38, 920167782 }
  0x9e   :  { %v197_v37 = vsel %vm185_vm7, %v175_v23, %v178_v32  ;;  %v109_v44 = vadd.s32 %v108_v35, %v104_v30  ;;  %vm186_vm10 = vcmp.lt.s32.totalorder %v382_v39, 2  ;;  %v195_v40 = vsel %vm187_vm8, %v178_v32, %v194_v34 }
  0x9f   :  { %v198_v45 = vsel %vm188_vm9, %v184_v41, 1326507024  ;;  %v189_v46 = vsel %vm185_vm7, %v169_v31, %v172_v21  ;;  %v191_v47 = vsel %vm187_vm8, %v175_v23, %v190_v43  ;;  %v196_v48 = vsel %vm186_vm10, %v193_v42, %v195_v40 }
  0xa0   :  { %v199_v49 = vsel %vm187_vm8, %v181_v38, %v198_v45  ;;  %v110_v50 = vadd.s32 536870912, %v109_v44  ;;  %v406_v52 = vmul.u32.u64.low %v201_v29, %v196_v48  ;;  %v407_v53 = vmul.u32.u64.high %v201_v29, %v196_v48, %v406_v52 }
  0xa1   :  { %v200_v51 = vsel %vm186_vm10, %v197_v37, %v199_v49  ;;  %v192_v57 = vsel %vm186_vm10, %v189_v46, %v191_v47  ;;  %v105_v9 = vadd.s32 %v395_v19, %v392_v18  ;;  %vm141_vm5 = vweird.f32 %v365_v15 }
  0xa2   :  { %v409_v54 = vmul.u32.u64.low %v201_v29, %v200_v51  ;;  %v410_v55 = vmul.u32.u64.high %v201_v29, %v200_v51, %v409_v54  ;;  %v111_v56 = vshrl.u32 %v110_v50, 30  ;;  %v211_v59 = vadd.s32 1, %v407_v53 }
  0xa3   :  { %v208_v39 = vmul.u32 %v201_v29, %v192_v57  ;;  %vm245_vm9 = vweird.f32 %v367_v16 }
  0xa4   :  { %v112_v58 = vshll.u32 %v111_v56, 30  ;;  %vm210_vm11 = vc.u32 %v410_v55, %v406_v52  ;;  %v209_v30 = vadd.s32 %v406_v52, %v410_v55  ;;  %v135_v35 = vsub.s32 4, %v111_v56 }
  0xa5   :  { %v212_v61 = vsel %vm210_vm11, %v211_v59, %v407_v53 }
  0xa6   :  { %v113_v60 = vsub.s32 %v109_v44, %v112_v58  ;;  %v213_v62 = vadd.s32 %v212_v61, %v208_v39  ;;  %v136_v45 = vsel %vm51_vm14, %v135_v35, %v111_v56 }
  0xa7   :  { %v138_v47 = vsel %vm50_vm15, 0, %v136_v45 }
  0xa8   :  { %v115_v63 = vsub.s32 0, %v113_v60  ;;  %v214_v0 = vadd.s32 536870912, %v213_v62  ;;  %v142_v51 = vadd.s32 3, %v138_v47 }
  0xaa   :  { %v274_v1 = vmin.u32 %v115_v63, %v113_v60  ;;  %v215_v2 = vshrl.u32 %v214_v0, 30  ;;  %v143_v53 = vand.u32 3, %v142_v51 }
  0xac   :  { %v117_v3 = vclz %v274_v1  ;;  %v216_v4 = vshll.u32 %v215_v2, 30  ;;  %v239_v49 = vsub.s32 4, %v215_v2  ;;  %vm148_vm2 = vcmp.eq.s32.totalorder %v143_v53, 2 }
  0xad   :  { %vm145_vm3 = vcmp.eq.s32.totalorder %v143_v53, 0  ;;  %vm144_vm4 = vcmp.lt.s32.totalorder %v143_v53, 2 }
  0xae   :  { %v275_v5 = vadd.s32 4294967294, %v117_v3  ;;  %v217_v6 = vsub.s32 %v213_v62, %v216_v4  ;;  %v240_v52 = vsel %vm155_vm0, %v239_v49, %v215_v2 }
  0xaf   :  { %v242_v55 = vsel %vm154_vm1, 0, %v240_v52 }
  0xb0   :  { %vm276_vm12 = vcmp.lt.s32.totalorder %v275_v5, 0  ;;  %v219_v8 = vsub.s32 0, %v217_v6  ;;  %v246_v39 = vadd.s32 3, %v242_v55 }
  0xb1   :  { %v120_v7 = vsel %vm276_vm12, 0, %v275_v5 }
  0xb2   :  { %v121_v10 = vsub.s32 32, %v120_v7  ;;  %v125_v11 = vsub.s32 4294967266, %v120_v7  ;;  %v278_v12 = vmin.u32 %v219_v8, %v217_v6  ;;  %v122_v13 = vshll.u32 %v113_v60, %v120_v7 }
  0xb3   :  { %v247_v62 = vand.u32 3, %v246_v39 }
  0xb4   :  { %v123_v14 = vshrl.u32 %v105_v9, %v121_v10  ;;  %v126_v20 = vadd.s32 127, %v125_v11  ;;  %v221_v21 = vclz %v278_v12 }
  0xb5   :  { %vm252_vm6 = vcmp.eq.s32.totalorder %v247_v62, 2  ;;  %vm249_vm7 = vcmp.eq.s32.totalorder %v247_v62, 0  ;;  %vm248_vm8 = vcmp.lt.s32.totalorder %v247_v62, 2 }
  0xb6   :  { %v124_v23 = vor.u32 %v123_v14, %v122_v13  ;;  %v127_v24 = vshll.u32 %v126_v20, 23  ;;  %v279_v25 = vadd.s32 4294967294, %v221_v21 }
  0xb8   :  { %v128_v26 = vor.u32 4788187, %v127_v24  ;;  %vm280_vm13 = vcmp.lt.s32.totalorder %v279_v25, 0  ;;  %v131_v28 = vcvt.s32.f32 %v124_v23 }
  0xb9   :  { %v224_v29 = vsel %vm280_vm13, 0, %v279_v25 }
  0xba   :  { %v129_v27 = vand.u32 2147483647, %v128_v26  ;;  %v225_v31 = vsub.s32 32, %v224_v29  ;;  %v229_v32 = vsub.s32 4294967266, %v224_v29  ;;  %v226_v19 = vshll.u32 %v217_v6, %v224_v29 }
  0xbc   :  { %v132_v18 = vmul.f32 %v131_v28, %v129_v27  ;;  %v227_v33 = vshrl.u32 %v209_v30, %v225_v31  ;;  %v230_v36 = vadd.s32 127, %v229_v32 }
  0xbe   :  { %v133_v38 = vxor.u32 2147483648, %v132_v18  ;;  %v228_v41 = vor.u32 %v227_v33, %v226_v19  ;;  %v231_v42 = vshll.u32 %v230_v36, 23 }
  0xc0   :  { %v134_v43 = vsel %vm51_vm14, %v133_v38, %v132_v18  ;;  %v232_v34 = vor.u32 4788187, %v231_v42  ;;  %v235_v40 = vcvt.s32.f32 %v228_v41 }
  0xc1   :  { %v137_v37 = vsel %vm50_vm15, %v365_v15, %v134_v43 }
  0xc2   :  { %298 = vcosq.f32 %v137_v37  ;;  %v233_v44 = vand.u32 2147483647, %v232_v34 }
  0xc3   :  { %300 = vsinq.f32 %v137_v37 }
  0xc4   :  { %v236_v46 = vmul.f32 %v235_v40, %v233_v44 }
  0xc6   :  { %v237_v48 = vxor.u32 2147483648, %v236_v46 }
  0xc8   :  { %v238_v50 = vsel %vm155_vm0, %v237_v48, %v236_v46 }
  0xc9   :  { %v241_v17 = vsel %vm154_vm1, %v367_v16, %v238_v50 }
  0xca   :  { %302 = vcosq.f32 %v241_v17 }
  0xcb   :  { %304 = vsinq.f32 %v241_v17 }
  0xcf   :  { %v299_v54 = vpop.eup %298 }
  0xd0   :  { %v301_v56 = vpop.eup %300  ;;  %v149_v57 = vxor.u32 2147483648, %v299_v54 }
  0xd1   :  { %v146_v58 = vxor.u32 2147483648, %v301_v56 }
  0xd2   :  { %v150_v59 = vsel %vm148_vm2, %v149_v57, %v301_v56 }
  0xd3   :  { %v147_v60 = vsel %vm145_vm3, %v299_v54, %v146_v58 }
  0xd4   :  { %v151_v22 = vsel %vm144_vm4, %v147_v60, %v150_v59 }
  0xd5   :  { %v152_v61 = vsel %vm141_vm5, nan, %v151_v22 }
  0xd6   :  { %257 = vst [vmem:[#allocation2] sm:$0xff] %v152_v61 }
  0xd7   :  { %v303_v63 = vpop.eup %302 }
  0xd8   :  { %v305_v0 = vpop.eup %304  ;;  %v253_v1 = vxor.u32 2147483648, %v303_v63 }
  0xd9   :  { %v250_v2 = vxor.u32 2147483648, %v305_v0 }
  0xda   :  { %v254_v3 = vsel %vm252_vm6, %v253_v1, %v305_v0 }
  0xdb   :  { %v251_v4 = vsel %vm249_vm7, %v303_v63, %v250_v2 }
  0xdc   :  { %v255_v5 = vsel %vm248_vm8, %v251_v4, %v254_v3 }
  0xdd   :  { %v256_v15 = vsel %vm245_vm9, nan, %v255_v5 }
  0xde   :  { %258 = vst [vmem:[#allocation2 + $0x8] sm:$0xff] %v256_v15 }
  0xdf   :  { %317 = shalt.err (!%p314_p4)
}
  0xe0   :  { %268 = dma.vmem_to_hbm [thread:$0]  %s266_s1, 256, %s433_s3, [#allocation3]  }
  0xe1   :  { %326 = dma.done.wait [#allocation3], 256  }
  0xe2   :  { %327 = vsyncadd [#allocation3], 4294967040 }
  0xe3   :  { %272 = vsyncpa [#allocation3], 1 }

</bundles_post_ra>
